<compile_context>
chip_gen: v7x
topology: tpu7x:2x2x1
jax: 0.10.0
libtpu: 0.0.40
codegen_flags: <defaults>
</compile_context>

<pallas_src>
import functools

import jax
import jax.numpy as jnp
from jax.experimental import pallas as pl
from jax.experimental.pallas import tpu as pltpu

_MiB = 1024 * 1024


def _round_up(x, m):
    return ((x + m - 1) // m) * m


def _cdiv(a, b):
    return -(-a // b)


# ---------------------------------------------------------------------------
# Generation-aware VMEM budget (v5e/v6e: 128 MiB physical, v7x: 64 MiB per TC).
# ---------------------------------------------------------------------------
@functools.lru_cache(maxsize=1)
def _vmem_params():
    cap = None
    try:
        info = pltpu.get_tpu_info()
        for attr in ("vmem_capacity_bytes", "vmem_size_bytes", "vmem_bytes"):
            v = getattr(info, attr, None)
            if v:
                cap = int(v)
                break
    except Exception:
        cap = None
    if cap is None:
        cap = 64 * _MiB                       # conservative default (v7x per-TC VMEM)
    if cap >= 128 * _MiB:                     # v5e / v6e
        return 96 * _MiB, 112 * _MiB          # (tiling budget, vmem_limit clamp)
    return 44 * _MiB, 56 * _MiB               # v7x: leave Mosaic-scratch headroom


# ---------------------------------------------------------------------------
# Kernels.
# ---------------------------------------------------------------------------
def _ffn_kernel_resident(x_ref, w1_ref, b1_ref, w2_ref, b2_ref, o_ref):
    # Whole F in one pass; weight index maps are constant -> weights stay in VMEM.
    # x_ref: (tm, E_pad), w1_ref: (E_pad, F_pad), b1_ref: (1, F_pad),
    # w2_ref: (F_pad, E_pad), b2_ref: (1, E_pad), o_ref: (tm, E_pad)
    h = jnp.dot(x_ref[...], w1_ref[...], preferred_element_type=jnp.float32)
    h = jnp.maximum(h + b1_ref[...], 0.0)            # bias + ReLU in f32 (v5e-safe VPU)
    # dropout (eval mode) == identity.  TODO(synk): training-mode dropout.
    out = jnp.dot(h.astype(w2_ref.dtype), w2_ref[...],
                  preferred_element_type=jnp.float32)
    o_ref[...] = (out + b2_ref[...]).astype(o_ref.dtype)


def _ffn_kernel_streamed(x_ref, w1_ref, b1_ref, w2_ref, b2_ref, o_ref, acc_ref):
    # F is tiled along grid axis 1 ("arbitrary" reduction); acc_ref persists across it.
    k = pl.program_id(1)
    h = jnp.dot(x_ref[...], w1_ref[...], preferred_element_type=jnp.float32)
    h = jnp.maximum(h + b1_ref[...], 0.0)
    # dropout (eval mode) == identity.
    partial = jnp.dot(h.astype(w2_ref.dtype), w2_ref[...],
                      preferred_element_type=jnp.float32)

    @pl.when(k == 0)
    def _():
        acc_ref[...] = partial                       # direct write: no zero-init pass

    @pl.when(k > 0)
    def _():
        acc_ref[...] += partial

    @pl.when(k == pl.num_programs(1) - 1)
    def _():
        o_ref[...] = (acc_ref[...] + b2_ref[...]).astype(o_ref.dtype)


# ---------------------------------------------------------------------------
# Tile / mode selection from the VMEM budget.
# ---------------------------------------------------------------------------
def _choose_tiles(m, e_pad, f_pad, x_bytes, out_bytes, budget):
    """Returns (tm, tf, mode, vmem_need, m_pad); mode in {"resident", "streamed"}."""
    row_align = 16 if x_bytes < 4 else 8             # bf16 packs 16 rows per vreg
    m8 = _round_up(max(m, 1), row_align)

    def need_resident(tm):
        return (2 * tm * e_pad * x_bytes             # x tile, double-buffered
                + 2 * tm * e_pad * out_bytes         # out tile, double-buffered
                + tm * f_pad * (4 + x_bytes)         # f32 hidden + compute-dtype cast
                + 2 * 2 * e_pad * f_pad * x_bytes    # W1^T + W2^T (conservative 2-buf)
                + 2 * (f_pad + e_pad) * 4)           # biases

    def need_streamed(tm, tf):
        return (2 * tm * e_pad * x_bytes
                + 2 * tm * e_pad * out_bytes
                + tm * e_pad * 4                     # f32 accumulator scratch
                + tm * tf * (4 + x_bytes)            # f32 hidden chunk + cast
                + 2 * e_pad * tf * x_bytes           # W1^T chunk, double-buffered
                + 2 * tf * e_pad * x_bytes           # W2^T chunk, double-buffered
                + 2 * (tf + e_pad) * 4)

    cands = {m8}
    if m8 >= 32:
        cands.add(_round_up(_cdiv(m8, 2), row_align))   # two roughly-equal tiles (v7x)
    for t in (1024, 768, 512, 384, 256, 128):
        if t <= m8:
            cands.add(t)

    best = None
    for tm in sorted(cands):
        n = _cdiv(m8, tm)
        waste = n * tm - m8
        if need_resident(tm) <= budget:
            mode, tf, need = "resident", f_pad, need_resident(tm)
        else:
            tf = None
            for c in (2048, 1024, 512, 256, 128):    # prefer 256-multiples (wide MXU)
                if c <= f_pad and f_pad % c == 0 and need_streamed(tm, c) <= budget:
                    tf = c
                    break
            if tf is None:
                continue
            mode, need = "streamed", need_streamed(tm, tf)
        score = (
            0 if mode == "resident" else 1,          # weight residency is the big win
            0 if (n >= 2 or m8 < 32) else 1,         # >= 2 row tiles (v7x dual-TC)
            waste,                                   # minimize zero-padded rows
            -(tm if mode == "streamed" else 0),      # streamed: big tm amortizes weights
            0 if tm % 256 == 0 else 1,               # 256-wide MXU alignment (v6e/v7x)
            -tm,
        )
        if best is None or score < best[0]:
            best = (score, tm, tf, mode, need)

    if best is None:
        # Nothing fits the budget (pathologically large E): minimal streamed tiles.
        tm = 128 if m8 >= 128 else m8
        tf = min(f_pad, 128)
        return tm, tf, "streamed", need_streamed(tm, tf), _round_up(m8, tm)

    _, tm, tf, mode, need = best
    return tm, tf, mode, need, _round_up(m8, tm)


# ---------------------------------------------------------------------------
# One-time parameter preparation (transpose / pad / cast OUTSIDE the hot path).
# ---------------------------------------------------------------------------
def prepare_ffn_params(w1, b1, w2, b2, compute_dtype=jnp.bfloat16):
    """w1: [F, E], b1: [F], w2: [E, F], b2: [E]  (PyTorch nn.Linear layout)."""
    f, e = w1.shape
    e_pad = _round_up(e, 128)
    f_pad = _round_up(f, 128)

    w1t = jnp.zeros((e_pad, f_pad), compute_dtype).at[:e, :f].set(
        jnp.asarray(w1).T.astype(compute_dtype))             # (E_pad, F_pad)
    w2t = jnp.zeros((f_pad, e_pad), compute_dtype).at[:f, :e].set(
        jnp.asarray(w2).T.astype(compute_dtype))             # (F_pad, E_pad)
    b1r = jnp.zeros((1, f_pad), jnp.float32).at[0, :f].set(
        jnp.asarray(b1).astype(jnp.float32))
    b2r = jnp.zeros((1, e_pad), jnp.float32).at[0, :e].set(
        jnp.asarray(b2).astype(jnp.float32))
    return {"w1t": w1t, "b1": b1r, "w2t": w2t, "b2": b2r}


# ---------------------------------------------------------------------------
# Forward pass.
# ---------------------------------------------------------------------------
@jax.jit
def _ffn_forward(x, w1t, b1r, w2t, b2r):
    orig_shape = x.shape
    orig_dtype = x.dtype
    e = orig_shape[-1]
    e_pad, f_pad = w1t.shape
    compute_dtype = w1t.dtype

    xm = x.reshape(-1, e)
    m = xm.shape[0]

    x_bytes = jnp.dtype(compute_dtype).itemsize
    out_bytes = jnp.dtype(orig_dtype).itemsize
    budget, limit_max = _vmem_params()
    tm, tf, mode, need, m_pad = _choose_tiles(m, e_pad, f_pad, x_bytes, out_bytes, budget)
    n_rows = m_pad // tm

    # Pad / cast only when needed (aligned inputs go straight into the kernel).
    needs_pad = (m_pad != m) or (e_pad != e)
    if needs_pad:
        xp = jnp.zeros((m_pad, e_pad), compute_dtype).at[:m, :e].set(
            xm.astype(compute_dtype))
    elif xm.dtype != compute_dtype:
        xp = xm.astype(compute_dtype)
    else:
        xp = xm

    vmem_limit = int(min(limit_max, max(32 * _MiB, need + 16 * _MiB)))

    w_reads = 1 if mode == "resident" else n_rows
    cost = pl.CostEstimate(
        flops=4 * m_pad * e_pad * f_pad,
        transcendentals=0,
        bytes_accessed=int(m_pad * e_pad * x_bytes
                           + m_pad * e_pad * out_bytes
                           + w_reads * (w1t.size + w2t.size) * x_bytes
                           + n_rows * (b1r.size + b2r.size) * 4),
    )

    if mode == "resident":
        grid_spec = pltpu.PrefetchScalarGridSpec(
            num_scalar_prefetch=0,
            grid=(n_rows,),
            in_specs=[
                pl.BlockSpec((tm, e_pad), lambda i: (i, 0)),       # x row tile
                pl.BlockSpec((e_pad, f_pad), lambda i: (0, 0)),    # W1^T (VMEM-resident)
                pl.BlockSpec((1, f_pad), lambda i: (0, 0)),        # b1
                pl.BlockSpec((f_pad, e_pad), lambda i: (0, 0)),    # W2^T (VMEM-resident)
                pl.BlockSpec((1, e_pad), lambda i: (0, 0)),        # b2
            ],
            out_specs=pl.BlockSpec((tm, e_pad), lambda i: (i, 0)),
            scratch_shapes=[],
        )
        kernel = _ffn_kernel_resident
        dims = ("parallel",)
    else:
        grid_spec = pltpu.PrefetchScalarGridSpec(
            num_scalar_prefetch=0,
            grid=(n_rows, f_pad // tf),
            in_specs=[
                pl.BlockSpec((tm, e_pad), lambda i, k: (i, 0)),    # x rows (reused over k)
                pl.BlockSpec((e_pad, tf), lambda i, k: (0, k)),    # W1^T F-chunk
                pl.BlockSpec((1, tf), lambda i, k: (0, k)),        # b1 F-chunk
                pl.BlockSpec((tf, e_pad), lambda i, k: (k, 0)),    # W2^T F-chunk
                pl.BlockSpec((1, e_pad), lambda i, k: (0, 0)),     # b2 (constant)
            ],
            out_specs=pl.BlockSpec((tm, e_pad), lambda i, k: (i, 0)),
            scratch_shapes=[pltpu.VMEM((tm, e_pad), jnp.float32)],
        )
        kernel = _ffn_kernel_streamed
        dims = ("parallel", "arbitrary")

    out = pl.pallas_call(
        kernel,
        out_shape=jax.ShapeDtypeStruct((m_pad, e_pad), orig_dtype),
        grid_spec=grid_spec,
        compiler_params=pltpu.CompilerParams(
            dimension_semantics=dims,
            vmem_limit_bytes=vmem_limit),
        cost_estimate=cost,
    )(xp, w1t, b1r, w2t, b2r)

    if needs_pad:
        out = out[:m, :e]
    return out.reshape(orig_shape)


def feed_forward(x, params):
    return _ffn_forward(x, params["w1t"], params["b1"], params["w2t"], params["b2"])


# ---------------------------------------------------------------------------
# Demo / correctness check.
# ---------------------------------------------------------------------------
def _init_linear(key, out_features, in_features, dtype=jnp.float32):
    # Mimics nn.Linear default init U(-1/sqrt(fan_in), 1/sqrt(fan_in)).
    kw, kb = jax.random.split(key)
    bound = 1.0 / (in_features ** 0.5)
    w = jax.random.uniform(kw, (out_features, in_features), dtype,
                           minval=-bound, maxval=bound)
    b = jax.random.uniform(kb, (out_features,), dtype,
                           minval=-bound, maxval=bound)
    return w, b


if __name__ == "__main__":
    key = jax.random.PRNGKey(0)
    k_x, k_l1, k_l2 = jax.random.split(key, 3)

    batch, seq, embedding_dim, d_ff = 2, 8, 32, 512

    x = jax.random.normal(k_x, (batch, seq, embedding_dim), jnp.float32)
    w1, b1 = _init_linear(k_l1, d_ff, embedding_dim)     # linear_1: E -> d_ff
    w2, b2 = _init_linear(k_l2, embedding_dim, d_ff)     # linear_2: d_ff -> E

    # Plain-JAX reference of the same forward (eval mode => dropout is identity).
    ref = jnp.maximum(x @ w1.T + b1, 0.0) @ w2.T + b2

    # 1) f32 compute path: tight check.
    params_f32 = prepare_ffn_params(w1, b1, w2, b2, compute_dtype=jnp.float32)
    out_f32 = jax.block_until_ready(feed_forward(x, params_f32))
    assert out_f32.shape == x.shape
    assert jnp.allclose(out_f32, ref, atol=2e-3, rtol=2e-3)

    # 2) bf16 compute path (production config): looser check.
    params_bf16 = prepare_ffn_params(w1, b1, w2, b2, compute_dtype=jnp.bfloat16)
    out_bf16 = jax.block_until_ready(feed_forward(x, params_bf16))
    assert out_bf16.shape == x.shape
    assert out_bf16.dtype == x.dtype
    assert jnp.allclose(out_bf16, ref, atol=5e-2, rtol=5e-2)

    # 3) Unaligned-M path (exercises wrapper padding + output slice).
    x2 = jax.random.normal(k_x, (3, 5, embedding_dim), jnp.float32)
    ref2 = jnp.maximum(x2 @ w1.T + b1, 0.0) @ w2.T + b2
    out2 = jax.block_until_ready(feed_forward(x2, params_bf16))
    assert out2.shape == x2.shape
    assert jnp.allclose(out2, ref2, atol=5e-2, rtol=5e-2)

    print("KERNEL_OK")
</pallas_src>

<mosaic_0001>
module attributes {stable_mosaic.version = 11 : i64} {
  func.func @_ffn_kernel_resident(%arg0: i32, %arg1: memref<16x128xf32, #tpu.memory_space<vmem>>, %arg2: memref<128x512xf32, #tpu.memory_space<vmem>>, %arg3: memref<1x512xf32, #tpu.memory_space<vmem>>, %arg4: memref<512x128xf32, #tpu.memory_space<vmem>>, %arg5: memref<1x128xf32, #tpu.memory_space<vmem>>, %arg6: memref<16x128xf32, #tpu.memory_space<vmem>>) attributes {dimension_semantics = [#tpu.dimension_semantics<parallel>], iteration_bounds = array<i64: 1>, scalar_prefetch = 0 : i64, scratch_operands = 0 : i64, tpu.core_type = #tpu.core_type<tc>, window_params = [{transform_indices = @transform_0, window_bounds = array<i64: 16, 128>}, {pipeline_mode = #tpu.pipeline_mode<synchronous>, transform_indices = @transform_1, window_bounds = array<i64: 128, 512>}, {pipeline_mode = #tpu.pipeline_mode<synchronous>, transform_indices = @transform_2, window_bounds = array<i64: 1, 512>}, {pipeline_mode = #tpu.pipeline_mode<synchronous>, transform_indices = @transform_3, window_bounds = array<i64: 512, 128>}, {pipeline_mode = #tpu.pipeline_mode<synchronous>, transform_indices = @transform_4, window_bounds = array<i64: 1, 128>}, {transform_indices = @transform_5, window_bounds = array<i64: 16, 128>}]} {
    %c0 = arith.constant 0 : index
    %c0_0 = arith.constant 0 : index
    %0 = vector.load %arg1[%c0, %c0_0] : memref<16x128xf32, #tpu.memory_space<vmem>>, vector<16x128xf32>
    %c0_1 = arith.constant 0 : index
    %c0_2 = arith.constant 0 : index
    %1 = vector.load %arg2[%c0_1, %c0_2] : memref<128x512xf32, #tpu.memory_space<vmem>>, vector<128x512xf32>
    %cst = arith.constant dense<0.000000e+00> : vector<16x512xf32>
    %2 = tpu.matmul %0, %1, %cst {dimension_numbers = #tpu.dot_dimension_numbers<[1], [0], [0], [1], [0, 0, 1, 1], [], []>} : vector<16x128xf32>, vector<128x512xf32>, vector<16x512xf32> -> vector<16x512xf32>
    %c0_3 = arith.constant 0 : index
    %c0_4 = arith.constant 0 : index
    %3 = vector.load %arg3[%c0_3, %c0_4] : memref<1x512xf32, #tpu.memory_space<vmem>>, vector<1x512xf32>
    %4 = vector.broadcast %3 : vector<1x512xf32> to vector<16x512xf32>
    %5 = arith.addf %2, %4 : vector<16x512xf32>
    %cst_5 = arith.constant 0.000000e+00 : f32
    %6 = vector.broadcast %cst_5 : f32 to vector<16x512xf32>
    %7 = arith.maximumf %5, %6 : vector<16x512xf32>
    %c0_6 = arith.constant 0 : index
    %c0_7 = arith.constant 0 : index
    %8 = vector.load %arg4[%c0_6, %c0_7] : memref<512x128xf32, #tpu.memory_space<vmem>>, vector<512x128xf32>
    %cst_8 = arith.constant dense<0.000000e+00> : vector<16x128xf32>
    %9 = tpu.matmul %7, %8, %cst_8 {dimension_numbers = #tpu.dot_dimension_numbers<[1], [0], [0], [1], [0, 0, 1, 1], [], []>} : vector<16x512xf32>, vector<512x128xf32>, vector<16x128xf32> -> vector<16x128xf32>
    %c0_9 = arith.constant 0 : index
    %c0_10 = arith.constant 0 : index
    %10 = vector.load %arg5[%c0_9, %c0_10] : memref<1x128xf32, #tpu.memory_space<vmem>>, vector<1x128xf32>
    %11 = vector.broadcast %10 : vector<1x128xf32> to vector<16x128xf32>
    %12 = arith.addf %9, %11 : vector<16x128xf32>
    %c0_11 = arith.constant 0 : index
    %c0_12 = arith.constant 0 : index
    %13 = vector.load %arg6[%c0_11, %c0_12] : memref<16x128xf32, #tpu.memory_space<vmem>>, vector<16x128xf32>
    tpu.vector_store %arg6[%c0_11, %c0_12], %12 {strides = array<i32>} : memref<16x128xf32, #tpu.memory_space<vmem>>, vector<16x128xf32>,
    return
  }
  func.func @transform_0(%arg0: i32) -> (i32, i32) {
    %c0_i32 = arith.constant 0 : i32
    %c0_i32_0 = arith.constant 0 : i32
    return %arg0, %c0_i32 : i32, i32
  }
  func.func @transform_1(%arg0: i32) -> (i32, i32) {
    %c0_i32 = arith.constant 0 : i32
    %c0_i32_0 = arith.constant 0 : i32
    %c0_i32_1 = arith.constant 0 : i32
    return %c0_i32, %c0_i32_0 : i32, i32
  }
  func.func @transform_2(%arg0: i32) -> (i32, i32) {
    %c0_i32 = arith.constant 0 : i32
    %c0_i32_0 = arith.constant 0 : i32
    %c0_i32_1 = arith.constant 0 : i32
    return %c0_i32, %c0_i32_0 : i32, i32
  }
  func.func @transform_3(%arg0: i32) -> (i32, i32) {
    %c0_i32 = arith.constant 0 : i32
    %c0_i32_0 = arith.constant 0 : i32
    %c0_i32_1 = arith.constant 0 : i32
    return %c0_i32, %c0_i32_0 : i32, i32
  }
  func.func @transform_4(%arg0: i32) -> (i32, i32) {
    %c0_i32 = arith.constant 0 : i32
    %c0_i32_0 = arith.constant 0 : i32
    %c0_i32_1 = arith.constant 0 : i32
    return %c0_i32, %c0_i32_0 : i32, i32
  }
  func.func @transform_5(%arg0: i32) -> (i32, i32) {
    %c0_i32 = arith.constant 0 : i32
    %c0_i32_0 = arith.constant 0 : i32
    return %arg0, %c0_i32 : i32, i32
  }
}

</mosaic_0001>

<bundles_post_ra>
// kernel: _ffn_forward.1
= control target key start
LH: loop header
LB: loop body
LE: loop exit
PB: predicated region body
PF: predicated region fallthrough
CT: control target
= control target key end

     0   :  { %10 = vsyncpa [#allocation3], 0  ;;  %s870_s0 = inlined_call_operand.vmem [shape: f32[16,128], index: 0, kind: input, shape index: {}]   ;;  %s871_s1 = inlined_call_operand.hbm [shape: f32[128,512], index: 1, kind: input, shape index: {}]   ;;  %s872_s2 = inlined_call_operand.vmem [shape: f32[1,512], index: 2, kind: input, shape index: {}]   ;;  %s873_s3 = inlined_call_operand.hbm [shape: f32[512,128], index: 3, kind: input, shape index: {}]   ;;  %s874_s4 = inlined_call_operand.vmem [shape: f32[1,128], index: 4, kind: input, shape index: {}]   ;;  %s875_s5 = inlined_call_operand.vmem [shape: f32[16,128], index: 5, kind: output, shape index: {}]  }
   0x1   :  { %11 = vsyncpa [#allocation5], 0  ;;  %s787_s18 = smov [#allocation2]   ;;  %s739_s22 = scalar_lea.hbm %s871_s1, 8192 }
   0x2   :  { %s19_s19 = sshll.u32 %s787_s18, 4  ;;  %p740_p0 = scmp.ne.s32.totalorder %s871_s1, %s739_s22  ;;  %s20_s19 = int_to_ptr.vmem [resolvable:$true] %s19_s19 }
   0x3   :  { %p743_p1 = scmp.lt.u32.totalorder %s739_s22, %s871_s1 }
   0x5   :  { %p745_p2 = pnand %p743_p1, %p740_p0 }
   0x7   :  { %748 = shalt.err (!%p745_p2)
}
   0x8   :  { %s749_s27 = scalar_lea.vmem %s20_s19, 8192  ;;  %p754_p4 = scmp.lt.s32.totalorder %s20_s19, %s20_s19 }
   0x9   :  { %p750_p3 = scmp.ne.s32.totalorder %s20_s19, %s749_s27  ;;  %p755_p5 = scmp.lt.s32.totalorder %s749_s27, %s749_s27 }
   0xb   :  { %p756_p6 = por %p755_p5, %p754_p4 }
   0xd   :  { %p757_p7 = pnand %p756_p6, %p750_p3 }
   0xf   :  { %760 = shalt.err (!%p757_p7)
}
  0x10   :  { %s788_s28 = smov 512   ;;  %s789_s29 = smov 32  }
  0x11   :  { %25 = dma.hbm_to_vmem [thread:$0]  %s871_s1, 8192, %s20_s19, [#allocation3], %s788_s28, %s788_s28, %s789_s29  }
  0x12   :  { %s790_s7 = smov [#allocation4]   ;;  %s761_s11 = scalar_lea.hbm %s873_s3, 8192 }
  0x13   :  { %s33_s8 = sshll.u32 %s790_s7, 4  ;;  %p762_p8 = scmp.ne.s32.totalorder %s873_s3, %s761_s11  ;;  %s34_s8 = int_to_ptr.vmem [resolvable:$true] %s33_s8 }
  0x14   :  { %p765_p9 = scmp.lt.u32.totalorder %s761_s11, %s873_s3 }
  0x16   :  { %p767_p10 = pnand %p765_p9, %p762_p8 }
  0x18   :  { %770 = shalt.err (!%p767_p10)
}
  0x19   :  { %s771_s16 = scalar_lea.vmem %s34_s8, 8192  ;;  %p776_p12 = scmp.lt.s32.totalorder %s34_s8, %s34_s8 }
  0x1a   :  { %p772_p11 = scmp.ne.s32.totalorder %s34_s8, %s771_s16  ;;  %p777_p13 = scmp.lt.s32.totalorder %s771_s16, %s771_s16 }
  0x1c   :  { %p778_p0 = por %p777_p13, %p776_p12 }
  0x1e   :  { %p779_p1 = pnand %p778_p0, %p772_p11 }
  0x20   :  { %782 = shalt.err (!%p779_p1)
}
  0x21   :  { %s791_s1 = smov 128   ;;  %s792_s17 = smov 8  }
  0x22   :  { %39 = dma.hbm_to_vmem [thread:$0]  %s873_s3, 8192, %s34_s8, [#allocation5], %s791_s1, %s791_s1, %s792_s17  }
  0x23   :  { %783 = dma.done.wait [#allocation3], 8192  }
  0x24   :  { %784 = vsyncadd [#allocation3], 4294959104 }
  0x25   :  { %785 = dma.done.wait [#allocation5], 8192  }
  0x26   :  { %786 = vsyncadd [#allocation5], 4294959104  ;;  %v793_v0 = vmov 0.0   ;;  %v51_v1 = vld [vmem:[#allocation2 + $0x8] sm:$0xff]  ;;  %v53_v3 = vld [vmem:[#allocation2 + $0x18] sm:$0xff] }
  0x27   :  { %200 = vmatprep.mubr.f32.mxu0 %v793_v0  ;;  %277 = vmatprep.mubr.f32.mxu1 %v793_v0  ;;  %v55_v2 = vld [vmem:[#allocation2 + $0x28] sm:$0xff]  ;;  %v57_v5 = vld [vmem:[#allocation2 + $0x38] sm:$0xff]  ;;  %v50_v6 = vld [vmem:[#allocation2] sm:$0xff] }
  0x28   :  { %v604_v4 = vpack.c.bf16 %v55_v2, %v51_v1  ;;  %v54_v7 = vld [vmem:[#allocation2 + $0x20] sm:$0xff]  ;;  %v636_v8 = vpack.c.bf16 %v57_v5, %v53_v3  ;;  %v52_v10 = vld [vmem:[#allocation2 + $0x10] sm:$0xff]  ;;  %v59_v12 = vld [vmem:[#allocation2 + $0x48] sm:$0xff] }
  0x29   :  { %v606_v9 = vpack.c.bf16 %v54_v7, %v50_v6  ;;  %v56_v11 = vld [vmem:[#allocation2 + $0x30] sm:$0xff]  ;;  %v63_v14 = vld [vmem:[#allocation2 + $0x68] sm:$0xff]  ;;  %v61_v15 = vld [vmem:[#allocation2 + $0x58] sm:$0xff] }
  0x2a   :  { %605 = vmatprep.subr.bf16.mxu0 %v604_v4  ;;  %v638_v13 = vpack.c.bf16 %v56_v11, %v52_v10  ;;  %v65_v16 = vld [vmem:[#allocation2 + $0x78] sm:$0xff]  ;;  %637 = vmatprep.subr.bf16.mxu1 %v636_v8  ;;  %v608_v17 = vpack.c.bf16 %v63_v14, %v59_v12  ;;  %v58_v19 = vld [vmem:[#allocation2 + $0x40] sm:$0xff]  ;;  %v60_v21 = vld [vmem:[#allocation2 + $0x50] sm:$0xff] }
  0x2b   :  { %607 = vmatpush1.bf16.msra.mxu0 %v606_v9  ;;  %v640_v18 = vpack.c.bf16 %v65_v16, %v61_v15  ;;  %v62_v20 = vld [vmem:[#allocation2 + $0x60] sm:$0xff]  ;;  %v64_v23 = vld [vmem:[#allocation2 + $0x70] sm:$0xff]  ;;  %v67_v24 = vld [vmem:[#allocation2 + $0x88] sm:$0xff] }
  0x2c   :  { %639 = vmatpush1.bf16.msra.mxu1 %v638_v13  ;;  %v610_v22 = vpack.c.bf16 %v62_v20, %v58_v19  ;;  %v71_v25 = vld [vmem:[#allocation2 + $0xa8] sm:$0xff]  ;;  %609 = vmatprep.subr.bf16.mxu0 %v608_v17  ;;  %v642_v26 = vpack.c.bf16 %v64_v23, %v60_v21  ;;  %v69_v28 = vld [vmem:[#allocation2 + $0x98] sm:$0xff]  ;;  %v66_v30 = vld [vmem:[#allocation2 + $0x80] sm:$0xff] }
  0x2d   :  { %641 = vmatprep.subr.bf16.mxu1 %v640_v18  ;;  %v612_v27 = vpack.c.bf16 %v71_v25, %v67_v24  ;;  %v73_v29 = vld [vmem:[#allocation2 + $0xb8] sm:$0xff]  ;;  %v70_v32 = vld [vmem:[#allocation2 + $0xa0] sm:$0xff]  ;;  %v68_v33 = vld [vmem:[#allocation2 + $0x90] sm:$0xff] }
  0x2e   :  { %v644_v31 = vpack.c.bf16 %v73_v29, %v69_v28  ;;  %v72_v34 = vld [vmem:[#allocation2 + $0xb0] sm:$0xff]  ;;  %v614_v35 = vpack.c.bf16 %v70_v32, %v66_v30  ;;  %v75_v36 = vld [vmem:[#allocation2 + $0xc8] sm:$0xff]  ;;  %v77_v38 = vld [vmem:[#allocation2 + $0xd8] sm:$0xff] }
  0x2f   :  { %611 = vmatpush1.bf16.msra.mxu0 %v610_v22  ;;  %v79_v37 = vld [vmem:[#allocation2 + $0xe8] sm:$0xff]  ;;  %v646_v39 = vpack.c.bf16 %v72_v34, %v68_v33  ;;  %v81_v41 = vld [vmem:[#allocation2 + $0xf8] sm:$0xff]  ;;  %v74_v42 = vld [vmem:[#allocation2 + $0xc0] sm:$0xff] }
  0x30   :  { %643 = vmatpush1.bf16.msra.mxu1 %v642_v26  ;;  %613 = vmatprep.subr.bf16.mxu0 %v612_v27  ;;  %v616_v40 = vpack.c.bf16 %v79_v37, %v75_v36  ;;  %v78_v43 = vld [vmem:[#allocation2 + $0xe0] sm:$0xff]  ;;  %v648_v44 = vpack.c.bf16 %v81_v41, %v77_v38  ;;  %v76_v45 = vld [vmem:[#allocation2 + $0xd0] sm:$0xff]  ;;  %v83_v47 = vld [vmem:[#allocation2 + $0x108] sm:$0xff] }
  0x31   :  { %645 = vmatprep.subr.bf16.mxu1 %v644_v31  ;;  %v80_v46 = vld [vmem:[#allocation2 + $0xf0] sm:$0xff]  ;;  %v87_v48 = vld [vmem:[#allocation2 + $0x128] sm:$0xff]  ;;  %v85_v49 = vld [vmem:[#allocation2 + $0x118] sm:$0xff]  ;;  %v618_v51 = vpack.c.bf16 %v78_v43, %v74_v42 }
  0x32   :  { %v89_v50 = vld [vmem:[#allocation2 + $0x138] sm:$0xff]  ;;  %v650_v52 = vpack.c.bf16 %v80_v46, %v76_v45  ;;  %v620_v53 = vpack.c.bf16 %v87_v48, %v83_v47  ;;  %v82_v54 = vld [vmem:[#allocation2 + $0x100] sm:$0xff]  ;;  %v84_v56 = vld [vmem:[#allocation2 + $0x110] sm:$0xff] }
  0x33   :  { %615 = vmatpush1.bf16.msra.mxu0 %v614_v35  ;;  %v86_v55 = vld [vmem:[#allocation2 + $0x120] sm:$0xff]  ;;  %v652_v57 = vpack.c.bf16 %v89_v50, %v85_v49  ;;  %v88_v58 = vld [vmem:[#allocation2 + $0x130] sm:$0xff]  ;;  %v91_v59 = vld [vmem:[#allocation2 + $0x148] sm:$0xff] }
  0x34   :  { %647 = vmatpush1.bf16.msra.mxu1 %v646_v39  ;;  %617 = vmatprep.subr.bf16.mxu0 %v616_v40  ;;  %v95_v60 = vld [vmem:[#allocation2 + $0x168] sm:$0xff]  ;;  %v93_v61 = vld [vmem:[#allocation2 + $0x158] sm:$0xff]  ;;  %v622_v63 = vpack.c.bf16 %v86_v55, %v82_v54  ;;  %v654_v1 = vpack.c.bf16 %v88_v58, %v84_v56  ;;  %v90_v3 = vld [vmem:[#allocation2 + $0x140] sm:$0xff] }
  0x35   :  { %649 = vmatprep.subr.bf16.mxu1 %v648_v44  ;;  %v97_v62 = vld [vmem:[#allocation2 + $0x178] sm:$0xff]  ;;  %v624_v2 = vpack.c.bf16 %v95_v60, %v91_v59  ;;  %v94_v4 = vld [vmem:[#allocation2 + $0x160] sm:$0xff]  ;;  %v92_v5 = vld [vmem:[#allocation2 + $0x150] sm:$0xff] }
  0x36   :  { %v656_v6 = vpack.c.bf16 %v97_v62, %v93_v61  ;;  %v96_v7 = vld [vmem:[#allocation2 + $0x170] sm:$0xff]  ;;  %v99_v8 = vld [vmem:[#allocation2 + $0x188] sm:$0xff]  ;;  %v101_v10 = vld [vmem:[#allocation2 + $0x198] sm:$0xff]  ;;  %v626_v12 = vpack.c.bf16 %v94_v4, %v90_v3 }
  0x37   :  { %619 = vmatpush1.bf16.msra.mxu0 %v618_v51  ;;  %v103_v9 = vld [vmem:[#allocation2 + $0x1a8] sm:$0xff]  ;;  %v105_v11 = vld [vmem:[#allocation2 + $0x1b8] sm:$0xff]  ;;  %v658_v13 = vpack.c.bf16 %v96_v7, %v92_v5  ;;  %v98_v15 = vld [vmem:[#allocation2 + $0x180] sm:$0xff] }
  0x38   :  { %651 = vmatpush1.bf16.msra.mxu1 %v650_v52  ;;  %621 = vmatprep.subr.bf16.mxu0 %v620_v53  ;;  %v628_v14 = vpack.c.bf16 %v103_v9, %v99_v8  ;;  %v102_v16 = vld [vmem:[#allocation2 + $0x1a0] sm:$0xff]  ;;  %v100_v17 = vld [vmem:[#allocation2 + $0x190] sm:$0xff]  ;;  %v660_v18 = vpack.c.bf16 %v105_v11, %v101_v10  ;;  %v107_v20 = vld [vmem:[#allocation2 + $0x1c8] sm:$0xff] }
  0x39   :  { %653 = vmatprep.subr.bf16.mxu1 %v652_v57  ;;  %v104_v19 = vld [vmem:[#allocation2 + $0x1b0] sm:$0xff]  ;;  %v111_v21 = vld [vmem:[#allocation2 + $0x1e8] sm:$0xff]  ;;  %v109_v22 = vld [vmem:[#allocation2 + $0x1d8] sm:$0xff]  ;;  %v630_v24 = vpack.c.bf16 %v102_v16, %v98_v15 }
  0x3a   :  { %v113_v23 = vld [vmem:[#allocation2 + $0x1f8] sm:$0xff]  ;;  %v662_v25 = vpack.c.bf16 %v104_v19, %v100_v17  ;;  %v632_v26 = vpack.c.bf16 %v111_v21, %v107_v20  ;;  %v106_v27 = vld [vmem:[#allocation2 + $0x1c0] sm:$0xff]  ;;  %v108_v29 = vld [vmem:[#allocation2 + $0x1d0] sm:$0xff] }
  0x3b   :  { %623 = vmatpush1.bf16.msra.mxu0 %v622_v63  ;;  %v110_v28 = vld [vmem:[#allocation2 + $0x1e0] sm:$0xff]  ;;  %v664_v30 = vpack.c.bf16 %v113_v23, %v109_v22  ;;  %v112_v31 = vld [vmem:[#allocation2 + $0x1f0] sm:$0xff]  ;;  %v315_v33 = vld [vmem:[#allocation4 + $0x88] sm:$0xff] }
  0x3c   :  { %655 = vmatpush1.bf16.msra.mxu1 %v654_v1  ;;  %625 = vmatprep.subr.bf16.mxu0 %v624_v2  ;;  %v314_v32 = vld [vmem:[#allocation4 + $0x80] sm:$0xff]  ;;  %v347_v35 = vld [vmem:[#allocation4 + $0x188] sm:$0xff]  ;;  %v634_v36 = vpack.c.bf16 %v110_v28, %v106_v27  ;;  %v666_v37 = vpack.c.bf16 %v112_v31, %v108_v29  ;;  %v316_v44 = vld [vmem:[#allocation4 + $0x90] sm:$0xff] }
  0x3d   :  { %657 = vmatprep.subr.bf16.mxu1 %v656_v6  ;;  %v346_v34 = vld [vmem:[#allocation4 + $0x180] sm:$0xff]  ;;  %v668_v38 = vpack.c.bf16 %v315_v33, %v314_v32  ;;  %v299_v41 = vld [vmem:[#allocation4 + $0x8] sm:$0xff]  ;;  %v317_v45 = vld [vmem:[#allocation4 + $0x98] sm:$0xff] }
  0x3e   :  { %v700_v39 = vpack.c.bf16 %v347_v35, %v346_v34  ;;  %v298_v40 = vld [vmem:[#allocation4] sm:$0xff]  ;;  %v331_v43 = vld [vmem:[#allocation4 + $0x108] sm:$0xff]  ;;  %v348_v47 = vld [vmem:[#allocation4 + $0x190] sm:$0xff]  ;;  %v672_v51 = vpack.c.bf16 %v317_v45, %v316_v44 }
  0x3f   :  { %627 = vmatpush1.bf16.msra.mxu0 %v626_v12  ;;  %v330_v42 = vld [vmem:[#allocation4 + $0x100] sm:$0xff]  ;;  %v349_v48 = vld [vmem:[#allocation4 + $0x198] sm:$0xff]  ;;  %v670_v49 = vpack.c.bf16 %v299_v41, %v298_v40  ;;  %v300_v52 = vld [vmem:[#allocation4 + $0x10] sm:$0xff] }
  0x40   :  { %659 = vmatpush1.bf16.msra.mxu1 %v658_v13  ;;  %629 = vmatprep.subr.bf16.mxu0 %v628_v14  ;;  %v48_v46 = vld [vmem:[%s870_s0] sm:$0xff]  ;;  %v702_v50 = vpack.c.bf16 %v331_v43, %v330_v42  ;;  %v301_v53 = vld [vmem:[#allocation4 + $0x18] sm:$0xff]  ;;  %v332_v54 = vld [vmem:[#allocation4 + $0x110] sm:$0xff]  ;;  %v704_v55 = vpack.c.bf16 %v349_v48, %v348_v47 }
  0x41   :  { %661 = vmatprep.subr.bf16.mxu1 %v660_v18  ;;  %v333_v56 = vld [vmem:[#allocation4 + $0x118] sm:$0xff]  ;;  %v318_v57 = vld [vmem:[#allocation4 + $0xa0] sm:$0xff]  ;;  %v319_v58 = vld [vmem:[#allocation4 + $0xa8] sm:$0xff]  ;;  %v674_v62 = vpack.c.bf16 %v301_v53, %v300_v52 }
  0x42   :  { %v49_v59 = vld [vmem:[%s870_s0 + $0x8] sm:$0xff]  ;;  %v350_v60 = vld [vmem:[#allocation4 + $0x1a0] sm:$0xff]  ;;  %v706_v63 = vpack.c.bf16 %v333_v56, %v332_v54  ;;  %v676_v1 = vpack.c.bf16 %v319_v58, %v318_v57  ;;  %v320_v7 = vld [vmem:[#allocation4 + $0xb0] sm:$0xff] }
  0x43   :  { %631 = vmatpush1.bf16.msra.mxu0 %v630_v24  ;;  %v351_v61 = vld [vmem:[#allocation4 + $0x1a8] sm:$0xff]  ;;  %v302_v2 = vld [vmem:[#allocation4 + $0x20] sm:$0xff]  ;;  %v321_v8 = vld [vmem:[#allocation4 + $0xb8] sm:$0xff] }
  0x44   :  { %663 = vmatpush1.bf16.msra.mxu1 %v662_v25  ;;  %633 = vmatprep.subr.bf16.mxu0 %v632_v26  ;;  %v303_v3 = vld [vmem:[#allocation4 + $0x28] sm:$0xff]  ;;  %v334_v4 = vld [vmem:[#allocation4 + $0x120] sm:$0xff]  ;;  %v708_v5 = vpack.c.bf16 %v351_v61, %v350_v60  ;;  %v352_v9 = vld [vmem:[#allocation4 + $0x1b0] sm:$0xff]  ;;  %v680_v12 = vpack.c.bf16 %v321_v8, %v320_v7 }
  0x45   :  { %665 = vmatprep.subr.bf16.mxu1 %v664_v30  ;;  %v335_v6 = vld [vmem:[#allocation4 + $0x128] sm:$0xff]  ;;  %v353_v10 = vld [vmem:[#allocation4 + $0x1b8] sm:$0xff]  ;;  %v304_v13 = vld [vmem:[#allocation4 + $0x30] sm:$0xff] }
  0x46   :  { %v710_v11 = vpack.c.bf16 %v335_v6, %v334_v4  ;;  %v305_v14 = vld [vmem:[#allocation4 + $0x38] sm:$0xff]  ;;  %v336_v15 = vld [vmem:[#allocation4 + $0x130] sm:$0xff]  ;;  %v712_v16 = vpack.c.bf16 %v353_v10, %v352_v9  ;;  %v322_v18 = vld [vmem:[#allocation4 + $0xc0] sm:$0xff] }
  0x47   :  { %635 = vmatpush1.bf16.msra.mxu0 %v634_v36  ;;  %v337_v17 = vld [vmem:[#allocation4 + $0x138] sm:$0xff]  ;;  %v323_v19 = vld [vmem:[#allocation4 + $0xc8] sm:$0xff]  ;;  %v354_v20 = vld [vmem:[#allocation4 + $0x1c0] sm:$0xff]  ;;  %v682_v22 = vpack.c.bf16 %v305_v14, %v304_v13 }
  0x48   :  { %667 = vmatpush1.bf16.msra.mxu1 %v666_v37  ;;  %669 = vmatprep.subr.bf16.mxu0 %v668_v38  ;;  %v355_v21 = vld [vmem:[#allocation4 + $0x1c8] sm:$0xff]  ;;  %v714_v23 = vpack.c.bf16 %v337_v17, %v336_v15  ;;  %v684_v24 = vpack.c.bf16 %v323_v19, %v322_v18  ;;  %v306_v25 = vld [vmem:[#allocation4 + $0x40] sm:$0xff]  ;;  %v324_v30 = vld [vmem:[#allocation4 + $0xd0] sm:$0xff] }
  0x49   :  { %701 = vmatprep.subr.bf16.mxu1 %v700_v39  ;;  %v307_v26 = vld [vmem:[#allocation4 + $0x48] sm:$0xff]  ;;  %v338_v27 = vld [vmem:[#allocation4 + $0x140] sm:$0xff]  ;;  %v716_v28 = vpack.c.bf16 %v355_v21, %v354_v20  ;;  %v325_v31 = vld [vmem:[#allocation4 + $0xd8] sm:$0xff] }
  0x4a   :  { %201 = vmatmul.mubr.f32.vlgmr.msra.gmra.mrb[0].mxu0 %v48_v46  ;;  %v339_v29 = vld [vmem:[#allocation4 + $0x148] sm:$0xff]  ;;  %v356_v32 = vld [vmem:[#allocation4 + $0x1d0] sm:$0xff]  ;;  %v357_v33 = vld [vmem:[#allocation4 + $0x1d8] sm:$0xff]  ;;  %v686_v34 = vpack.c.bf16 %v307_v26, %v306_v25  ;;  %v688_v36 = vpack.c.bf16 %v325_v31, %v324_v30 }
  0x4b   :  { %278 = vmatmul.mubr.f32.vlgmr.msra.gmra.mrb[0].mxu1 %v48_v46  ;;  %206 = vmatprep.mubr.f32.mxu0 %v793_v0  ;;  %v718_v35 = vpack.c.bf16 %v339_v29, %v338_v27  ;;  %v308_v37 = vld [vmem:[#allocation4 + $0x50] sm:$0xff]  ;;  %v309_v38 = vld [vmem:[#allocation4 + $0x58] sm:$0xff]  ;;  %v720_v40 = vpack.c.bf16 %v357_v33, %v356_v32  ;;  %v326_v42 = vld [vmem:[#allocation4 + $0xe0] sm:$0xff] }
  0x4c   :  { %283 = vmatprep.mubr.f32.mxu1 %v793_v0  ;;  %671 = vmatpush3.bf16.msra.mxu0 %v670_v49  ;;  %v678_v0 = vpack.c.bf16 %v303_v3, %v302_v2  ;;  %v340_v39 = vld [vmem:[#allocation4 + $0x150] sm:$0xff]  ;;  %v341_v41 = vld [vmem:[#allocation4 + $0x158] sm:$0xff]  ;;  %v327_v43 = vld [vmem:[#allocation4 + $0xe8] sm:$0xff]  ;;  %v690_v46 = vpack.c.bf16 %v309_v38, %v308_v37 }
  0x4d   :  { %703 = vmatpush3.bf16.msra.mxu1 %v702_v50  ;;  %673 = vmatprep.subr.bf16.mxu0 %v672_v51  ;;  %v358_v44 = vld [vmem:[#allocation4 + $0x1e0] sm:$0xff]  ;;  %v359_v45 = vld [vmem:[#allocation4 + $0x1e8] sm:$0xff]  ;;  %v722_v47 = vpack.c.bf16 %v341_v41, %v340_v39  ;;  %v692_v48 = vpack.c.bf16 %v327_v43, %v326_v42  ;;  %v328_v56 = vld [vmem:[#allocation4 + $0xf0] sm:$0xff] }
  0x4e   :  { %207 = vmatmul.mubr.f32.gmra.mrb[2].mxu0 %v49_v59  ;;  %705 = vmatprep.subr.bf16.mxu1 %v704_v55  ;;  %v724_v49 = vpack.c.bf16 %v359_v45, %v358_v44  ;;  %v310_v50 = vld [vmem:[#allocation4 + $0x60] sm:$0xff]  ;;  %v311_v51 = vld [vmem:[#allocation4 + $0x68] sm:$0xff]  ;;  %v329_v57 = vld [vmem:[#allocation4 + $0xf8] sm:$0xff] }
  0x4f   :  { %284 = vmatmul.mubr.f32.gmra.mrb[2].mxu1 %v49_v59  ;;  %v342_v52 = vld [vmem:[#allocation4 + $0x160] sm:$0xff]  ;;  %v694_v53 = vpack.c.bf16 %v311_v51, %v310_v50  ;;  %v343_v54 = vld [vmem:[#allocation4 + $0x168] sm:$0xff]  ;;  %v360_v58 = vld [vmem:[#allocation4 + $0x1f0] sm:$0xff]  ;;  %v696_v59 = vpack.c.bf16 %v329_v57, %v328_v56 }
  0x50   :  { %675 = vmatpush3.bf16.msra.mxu0 %v674_v62  ;;  %v726_v55 = vpack.c.bf16 %v343_v54, %v342_v52  ;;  %v361_v60 = vld [vmem:[#allocation4 + $0x1f8] sm:$0xff]  ;;  %v312_v61 = vld [vmem:[#allocation4 + $0x70] sm:$0xff]  ;;  %v114_v8 = vld [vmem:[%s872_s2] sm:$0xf] }
  0x51   :  { %707 = vmatpush3.bf16.msra.mxu1 %v706_v63  ;;  %677 = vmatprep.subr.bf16.mxu0 %v676_v1  ;;  %v313_v62 = vld [vmem:[#allocation4 + $0x78] sm:$0xff]  ;;  %v728_v63 = vpack.c.bf16 %v361_v60, %v360_v58  ;;  %v344_v2 = vld [vmem:[#allocation4 + $0x170] sm:$0xff]  ;;  %v527_v41 = vld [vmem:[%s874_s4] ss:$0 sm:$0xff] }
  0x52   :  { %709 = vmatprep.subr.bf16.mxu1 %v708_v5  ;;  %v698_v1 = vpack.c.bf16 %v313_v62, %v312_v61  ;;  %v345_v3 = vld [vmem:[#allocation4 + $0x178] sm:$0xff]  ;;  %v116_v5 = vlaneseq }
  0x53   :  { %v730_v4 = vpack.c.bf16 %v345_v3, %v344_v2 }
  0x54   :  { %679 = vmatpush3.bf16.msra.mxu0 %v678_v0  ;;  %v117_v6 = vshrl.u32 %v116_v5, 7 }
  0x55   :  { %711 = vmatpush3.bf16.msra.mxu1 %v710_v11  ;;  %681 = vmatprep.subr.bf16.mxu0 %v680_v12 }
  0x56   :  { %713 = vmatprep.subr.bf16.mxu1 %v712_v16  ;;  %v118_v7 = vsub.s32 0, %v117_v6  ;;  %v126_v9 = vsub.s32 2, %v117_v6  ;;  %v122_v10 = vsub.s32 1, %v117_v6  ;;  %v130_v0 = vsub.s32 3, %v117_v6 }
  0x58   :  { %683 = vmatpush3.bf16.msra.mxu0 %v682_v22  ;;  %v119_v11 = vrot.slane %v114_v8, %v118_v7  ;;  %v127_v12 = vrot.slane %v114_v8, %v126_v9  ;;  %v123_v13 = vrot.slane %v114_v8, %v122_v10  ;;  %v131_v14 = vrot.slane %v114_v8, %v130_v0 }
  0x59   :  { %715 = vmatpush3.bf16.msra.mxu1 %v714_v23  ;;  %685 = vmatprep.subr.bf16.mxu0 %v684_v24 }
  0x5a   :  { %717 = vmatprep.subr.bf16.mxu1 %v716_v28 }
  0x5c   :  { %687 = vmatpush3.bf16.msra.mxu0 %v686_v34 }
  0x5d   :  { %719 = vmatpush3.bf16.msra.mxu1 %v718_v35  ;;  %689 = vmatprep.subr.bf16.mxu0 %v688_v36 }
  0x5e   :  { %721 = vmatprep.subr.bf16.mxu1 %v720_v40 }
  0x60   :  { %691 = vmatpush3.bf16.msra.mxu0 %v690_v46 }
  0x61   :  { %723 = vmatpush3.bf16.msra.mxu1 %v722_v47  ;;  %693 = vmatprep.subr.bf16.mxu0 %v692_v48 }
  0x62   :  { %725 = vmatprep.subr.bf16.mxu1 %v724_v49 }
  0x64   :  { %695 = vmatpush3.bf16.msra.mxu0 %v694_v53 }
  0x65   :  { %727 = vmatpush3.bf16.msra.mxu1 %v726_v55  ;;  %697 = vmatprep.subr.bf16.mxu0 %v696_v59 }
  0x66   :  { %729 = vmatprep.subr.bf16.mxu1 %v728_v63 }
  0x68   :  { %699 = vmatpush3.bf16.msra.mxu0 %v698_v1 }
  0x69   :  { %731 = vmatpush3.bf16.msra.mxu1 %v730_v4 }
 0x11d   :  { %v202_v15 = vpop.f32.mrb[0].mxu0 }
 0x11e   :  { %v203_v16 = vadd.f32 %v202_v15, %v119_v11  ;;  %v279_v17 = vpop.f32.mrb[0].mxu1  ;;  %v204_v18 = vpop.f32.mrb[1].mxu0 }
 0x11f   :  { %v280_v19 = vadd.f32 %v279_v17, %v127_v12  ;;  %v205_v20 = vadd.f32 %v204_v18, %v123_v13  ;;  %v281_v21 = vpop.f32.mrb[1].mxu1 }
 0x120   :  { %v282_v22 = vadd.f32 %v281_v21, %v131_v14  ;;  %v290_v26 = vmax.f32 %v203_v16, 0.0 }
 0x121   :  { %v292_v23 = vmax.f32 %v280_v19, 0.0  ;;  %v291_v24 = vmax.f32 %v205_v20, 0.0  ;;  %v208_v25 = vpop.f32.mrb[2].mxu0 }
 0x122   :  { %v293_v27 = vmax.f32 %v282_v22, 0.0  ;;  %v209_v28 = vadd.f32 %v208_v25, %v119_v11  ;;  %v285_v29 = vpop.f32.mrb[2].mxu1  ;;  %v210_v30 = vpop.f32.mrb[3].mxu0 }
 0x123   :  { %v286_v31 = vadd.f32 %v285_v29, %v127_v12  ;;  %v211_v32 = vadd.f32 %v210_v30, %v123_v13  ;;  %v287_v33 = vpop.f32.mrb[3].mxu1  ;;  %433 = vmatprep.mubr.f32.mxu0 %v291_v24 }
 0x124   :  { %v288_v34 = vadd.f32 %v287_v33, %v131_v14  ;;  %508 = vmatprep.mubr.f32.mxu1 %v293_v27  ;;  %434 = vmatmul.mubr.f32.vlgmr.msra.gmra.mrb[4].mxu0 %v290_v26  ;;  %v294_v37 = vmax.f32 %v209_v28, 0.0 }
 0x125   :  { %v296_v35 = vmax.f32 %v286_v31, 0.0  ;;  %v295_v36 = vmax.f32 %v211_v32, 0.0  ;;  %509 = vmatmul.mubr.f32.vlgmr.msra.gmra.mrb[4].mxu1 %v292_v23 }
 0x126   :  { %v297_v38 = vmax.f32 %v288_v34, 0.0 }
 0x127   :  { %438 = vmatprep.mubr.f32.mxu0 %v295_v36 }
 0x128   :  { %513 = vmatprep.mubr.f32.mxu1 %v297_v38  ;;  %439 = vmatmul.mubr.f32.gmra.mrb[6].mxu0 %v294_v37 }
 0x129   :  { %514 = vmatmul.mubr.f32.gmra.mrb[6].mxu1 %v296_v35 }
 0x1f7   :  { %v560_v39 = vpop.f32.mrb[4].mxu0 }
 0x1f8   :  { %v598_v40 = vpop.f32.mrb[4].mxu1  ;;  %v561_v42 = vpop.f32.mrb[5].mxu0 }
 0x1f9   :  { %v562_v43 = vadd.f32 %v561_v42, %v560_v39  ;;  %v599_v44 = vpop.f32.mrb[5].mxu1 }
 0x1fa   :  { %v600_v45 = vadd.f32 %v599_v44, %v598_v40 }
 0x1fb   :  { %v436_v46 = vadd.f32 %v562_v43, %v527_v41  ;;  %v563_v47 = vpop.f32.mrb[6].mxu0 }
 0x1fc   :  { %v601_v48 = vpop.f32.mrb[6].mxu1  ;;  %v564_v49 = vpop.f32.mrb[7].mxu0 }
 0x1fd   :  { %v511_v50 = vadd.f32 %v600_v45, %v436_v46  ;;  %v565_v51 = vadd.f32 %v564_v49, %v563_v47  ;;  %v602_v52 = vpop.f32.mrb[7].mxu1 }
 0x1fe   :  { %v603_v53 = vadd.f32 %v602_v52, %v601_v48 }
 0x1ff   :  { %519 = vst [vmem:[%s875_s5] sm:$0xff] %v511_v50  ;;  %v441_v54 = vadd.f32 %v565_v51, %v527_v41 }
 0x201   :  { %v516_v55 = vadd.f32 %v603_v53, %v441_v54 }
 0x203   :  { %520 = vst [vmem:[%s875_s5 + $0x8] sm:$0xff] %v516_v55 }
 0x204   :  { %525 = vsyncpa [#allocation3], 1 }
 0x205   :  { %526 = vsyncpa [#allocation5], 1 }

</bundles_post_ra>
